<compile_context>
chip_gen: v7x
topology: tpu7x:2x2x1
jax: 0.10.0
libtpu: 0.0.40
codegen_flags: <defaults>
</compile_context>

<pallas_src>
import functools
import math

import jax
import jax.numpy as jnp
from jax.experimental import pallas as pl
from jax.experimental.pallas import tpu as pltpu

DROP_P = 0.3
# keep an element iff hash_bits >= _DROP_THRESHOLD  (P = 1 - 0.3 = 0.7, exact to 2^-32)
_DROP_THRESHOLD = int(round(DROP_P * (1 << 32)))
_GOLDEN = 0x9E3779B9


def _round_up(x, m):
    return ((x + m - 1) // m) * m


def _dropout_keep_mask(ctr_u32, seed_u32):
    """Counter-based hash (murmur3 finalizer) -> boolean keep mask.

    Pure jnp integer ops: lowers on TPU (VPU int32 slots) and in interpret
    mode. Used identically in-kernel and by the host reference.
    """
    h = ctr_u32 + seed_u32 * jnp.uint32(_GOLDEN)
    h = h ^ (h >> 16)
    h = h * jnp.uint32(0x7FEB352D)
    h = h ^ (h >> 15)
    h = h * jnp.uint32(0x846CA68B)
    h = h ^ (h >> 16)
    return h >= jnp.uint32(_DROP_THRESHOLD)


def _linear_prelu_kernel(seed_ref, alpha_ref, emb_ref, w_ref, b_ref, out_ref,
                         *, apply_dropout, tb, cin):
    x = emb_ref[...].astype(jnp.float32)                       # (TB, Cin)

    if apply_dropout:
        # Per-element global counter: mask is independent per batch tile and
        # identical regardless of the tiling chosen.
        pid = pl.program_id(0)
        rows = jax.lax.broadcasted_iota(jnp.int32, x.shape, 0) + pid * tb
        cols = jax.lax.broadcasted_iota(jnp.int32, x.shape, 1)
        ctr = (rows * cin + cols).astype(jnp.uint32)
        keep = _dropout_keep_mask(ctr, seed_ref[0].astype(jnp.uint32))
        x = jnp.where(keep, x * (1.0 / (1.0 - DROP_P)), 0.0)

    # (TB, Cin) contracted with (CoutPad, Cin) on dim 1 of both -> (TB, CoutPad).
    # No wrapper-side transpose of the PyTorch-layout weight; MXU handles it.
    y = jax.lax.dot_general(
        x, w_ref[...],
        dimension_numbers=(((1,), (1,)), ((), ())),
        preferred_element_type=jnp.float32,
        precision=jax.lax.Precision.HIGHEST)
    y = y + b_ref[...]                                          # (1, CoutPad) broadcast
    a = alpha_ref[0]
    out_ref[...] = jnp.where(y > 0, y, a * y)                   # PReLU


def simple_linear_forward(emb, w_fc, bias, alpha, *, flag='no', seed=0):
    """emb: (B, Cin) f32; w_fc: (Cout, Cin) f32 (PyTorch layout); bias: (Cout,);
    alpha: scalar PReLU slope. flag='yes' applies dropout(0.3) to emb first."""
    B, Cin = emb.shape
    Cout = w_fc.shape[0]

    LANE = 128
    cout_pad = _round_up(max(Cout, LANE), LANE)    # lane-dense output (>=128 lanes)

    # Batch tile: big enough for HBM-roofline pipelining, tiny vs VMEM.
    # Per step: (TB*Cin + TB*cout_pad)*4 B doubled-buffered  (~0.65 MiB at TB=1024).
    TB_MAX = 1024
    tb = min(TB_MAX, _round_up(B, 8))
    b_pad = _round_up(B, tb)

    emb_p = emb.astype(jnp.float32)
    if b_pad != B:
        emb_p = jnp.pad(emb_p, ((0, b_pad - B), (0, 0)))

    w_p = w_fc.astype(jnp.float32)
    b_p = bias.astype(jnp.float32)
    if cout_pad != Cout:
        w_p = jnp.pad(w_p, ((0, cout_pad - Cout), (0, 0)))
        b_p = jnp.pad(b_p, ((0, cout_pad - Cout),))
    b_p = b_p.reshape(1, cout_pad)

    seed_arr = jnp.asarray([seed], dtype=jnp.int32)
    alpha_arr = jnp.asarray(alpha, dtype=jnp.float32).reshape(1)

    kernel = functools.partial(_linear_prelu_kernel,
                               apply_dropout=(flag == 'yes'),
                               tb=tb, cin=Cin)

    grid = (b_pad // tb,)

    # Mosaic-specific params only when actually compiling for TPU
    # (harmlessly skipped under the CPU/interpret fallback).
    compiler_params = None
    if jax.default_backend() == "tpu":
        compiler_params = pltpu.CompilerParams(
            # batch axis is embarrassingly parallel -> shards across v7x's 2 TCs
            dimension_semantics=("parallel",),
            # explicit scoped-VMEM budget, safe on v7x's 64 MiB physical VMEM
            vmem_limit_bytes=32 * 1024 * 1024,
        )

    out = pl.pallas_call(
        kernel,
        out_shape=jax.ShapeDtypeStruct((b_pad, cout_pad), jnp.float32),
        grid=grid,
        in_specs=[
            pl.BlockSpec(memory_space=pltpu.MemorySpace.SMEM),      # seed (scalar)
            pl.BlockSpec(memory_space=pltpu.MemorySpace.SMEM),      # PReLU alpha
            pl.BlockSpec((tb, Cin), lambda i: (i, 0)),              # emb batch tile
            pl.BlockSpec((cout_pad, Cin), lambda i: (0, 0)),        # weight (resident)
            pl.BlockSpec((1, cout_pad), lambda i: (0, 0)),          # bias (resident)
        ],
        out_specs=pl.BlockSpec((tb, cout_pad), lambda i: (i, 0)),   # lane-dense store
        compiler_params=compiler_params,
    )(seed_arr, alpha_arr, emb_p, w_p, b_p)

    return out[:B, :Cout]


if __name__ == "__main__":
    # Small shapes consistent with the module: bias has shape (64,), so
    # out_channels = 64; pick in_channels = 32, batch = 8.
    B, Cin, Cout = 8, 32, 64

    key = jax.random.PRNGKey(0)
    k_emb, k_w = jax.random.split(key)

    emb = jax.random.normal(k_emb, (B, Cin), dtype=jnp.float32)

    # Deterministic parameter init mirroring the module's __init__:
    #   fc.weight ~ xavier_normal_(gain=1.414)  (Linear bias disabled)
    std = 1.414 * math.sqrt(2.0 / (Cin + Cout))
    w_fc = std * jax.random.normal(k_w, (Cout, Cin), dtype=jnp.float32)
    #   self.bias filled with 0.0
    bias = jnp.zeros((Cout,), dtype=jnp.float32)
    #   nn.PReLU() default slope
    alpha = jnp.float32(0.25)

    # flag='no' path (deterministic).
    out_no = simple_linear_forward(emb, w_fc, bias, alpha, flag='no')
    jax.block_until_ready(out_no)

    # flag='yes' path (in-kernel dropout).
    seed = 123
    out_yes = simple_linear_forward(emb, w_fc, bias, alpha, flag='yes', seed=seed)
    jax.block_until_ready(out_yes)

    # Reference: deterministic path.
    ref = jnp.matmul(emb, w_fc.T, precision=jax.lax.Precision.HIGHEST) + bias[None, :]
    ref = jnp.where(ref > 0, ref, alpha * ref)
    assert out_no.shape == (B, Cout) and out_no.dtype == jnp.float32
    assert jnp.allclose(out_no, ref, atol=1e-5, rtol=1e-5), "kernel mismatch vs reference (no-dropout)"

    # Reference: dropout path (replicates the in-kernel counter hash exactly).
    ctr = (jnp.arange(B, dtype=jnp.int32)[:, None] * Cin
           + jnp.arange(Cin, dtype=jnp.int32)[None, :]).astype(jnp.uint32)
    keep = _dropout_keep_mask(ctr, jnp.uint32(seed))
    x_drop = jnp.where(keep, emb * (1.0 / (1.0 - DROP_P)), 0.0)
    ref_yes = jnp.matmul(x_drop, w_fc.T, precision=jax.lax.Precision.HIGHEST) + bias[None, :]
    ref_yes = jnp.where(ref_yes > 0, ref_yes, alpha * ref_yes)
    assert out_yes.shape == (B, Cout)
    assert jnp.allclose(out_yes, ref_yes, atol=1e-5, rtol=1e-5), "kernel mismatch vs reference (dropout)"

    print("KERNEL_OK")
</pallas_src>

<mosaic_0001>
module attributes {stable_mosaic.version = 11 : i64} {
  func.func @_linear_prelu_kernel(%arg0: i32, %arg1: memref<1xi32, #tpu.memory_space<smem>>, %arg2: memref<1xf32, #tpu.memory_space<smem>>, %arg3: memref<8x32xf32, #tpu.memory_space<vmem>>, %arg4: memref<128x32xf32, #tpu.memory_space<vmem>>, %arg5: memref<1x128xf32, #tpu.memory_space<vmem>>, %arg6: memref<8x128xf32, #tpu.memory_space<vmem>>) attributes {dimension_semantics = [#tpu.dimension_semantics<arbitrary>], iteration_bounds = array<i64: 1>, scalar_prefetch = 0 : i64, scratch_operands = 0 : i64, tpu.core_type = #tpu.core_type<tc>, window_params = [{transform_indices = @transform_0, window_bounds = array<i64: 1>}, {transform_indices = @transform_1, window_bounds = array<i64: 1>}, {transform_indices = @transform_2, window_bounds = array<i64: 8, 32>}, {pipeline_mode = #tpu.pipeline_mode<synchronous>, transform_indices = @transform_3, window_bounds = array<i64: 128, 32>}, {pipeline_mode = #tpu.pipeline_mode<synchronous>, transform_indices = @transform_4, window_bounds = array<i64: 1, 128>}, {transform_indices = @transform_5, window_bounds = array<i64: 8, 128>}]} {
    %c0 = arith.constant 0 : index
    %c0_0 = arith.constant 0 : index
    %0 = vector.load %arg3[%c0, %c0_0] : memref<8x32xf32, #tpu.memory_space<vmem>>, vector<8x32xf32>
    %c0_1 = arith.constant 0 : index
    %c0_2 = arith.constant 0 : index
    %1 = vector.load %arg4[%c0_1, %c0_2] : memref<128x32xf32, #tpu.memory_space<vmem>>, vector<128x32xf32>
    %cst = arith.constant dense<0.000000e+00> : vector<8x128xf32>
    %2 = tpu.matmul %0, %1, %cst {dimension_numbers = #tpu.dot_dimension_numbers<[1], [1], [0], [0], [0, 0, 1, 0], [], []>, precision = #tpu.contract_precision<fp32>} : vector<8x32xf32>, vector<128x32xf32>, vector<8x128xf32> -> vector<8x128xf32>
    %c0_3 = arith.constant 0 : index
    %c0_4 = arith.constant 0 : index
    %3 = vector.load %arg5[%c0_3, %c0_4] : memref<1x128xf32, #tpu.memory_space<vmem>>, vector<1x128xf32>
    %4 = vector.broadcast %3 : vector<1x128xf32> to vector<8x128xf32>
    %5 = arith.addf %2, %4 : vector<8x128xf32>
    %c0_5 = arith.constant 0 : index
    %6 = memref.load %arg2[%c0_5] : memref<1xf32, #tpu.memory_space<smem>>
    %cst_6 = arith.constant 0.000000e+00 : f32
    %7 = vector.broadcast %cst_6 : f32 to vector<8x128xf32>
    %8 = arith.cmpf ogt, %5, %7 : vector<8x128xf32>
    %9 = vector.broadcast %6 : f32 to vector<8x128xf32>
    %10 = arith.mulf %9, %5 : vector<8x128xf32>
    %11 = arith.select %8, %5, %10 : vector<8x128xi1>, vector<8x128xf32>
    %c0_7 = arith.constant 0 : index
    %c0_8 = arith.constant 0 : index
    %12 = vector.load %arg6[%c0_7, %c0_8] : memref<8x128xf32, #tpu.memory_space<vmem>>, vector<8x128xf32>
    tpu.vector_store %arg6[%c0_7, %c0_8], %11 {strides = array<i32>} : memref<8x128xf32, #tpu.memory_space<vmem>>, vector<8x128xf32>,
    return
  }
  func.func @transform_0(%arg0: i32) -> i32 {
    %c0_i32 = arith.constant 0 : i32
    %c0_i32_0 = arith.constant 0 : i32
    return %c0_i32 : i32
  }
  func.func @transform_1(%arg0: i32) -> i32 {
    %c0_i32 = arith.constant 0 : i32
    %c0_i32_0 = arith.constant 0 : i32
    return %c0_i32 : i32
  }
  func.func @transform_2(%arg0: i32) -> (i32, i32) {
    %c0_i32 = arith.constant 0 : i32
    %c0_i32_0 = arith.constant 0 : i32
    return %arg0, %c0_i32 : i32, i32
  }
  func.func @transform_3(%arg0: i32) -> (i32, i32) {
    %c0_i32 = arith.constant 0 : i32
    %c0_i32_0 = arith.constant 0 : i32
    %c0_i32_1 = arith.constant 0 : i32
    return %c0_i32, %c0_i32_0 : i32, i32
  }
  func.func @transform_4(%arg0: i32) -> (i32, i32) {
    %c0_i32 = arith.constant 0 : i32
    %c0_i32_0 = arith.constant 0 : i32
    %c0_i32_1 = arith.constant 0 : i32
    return %c0_i32, %c0_i32_0 : i32, i32
  }
  func.func @transform_5(%arg0: i32) -> (i32, i32) {
    %c0_i32 = arith.constant 0 : i32
    %c0_i32_0 = arith.constant 0 : i32
    return %arg0, %c0_i32 : i32, i32
  }
}

</mosaic_0001>

<bundles_post_ra>
// kernel: tpu_custom_call.1
= control target key start
LH: loop header
LB: loop body
LE: loop exit
PB: predicated region body
PF: predicated region fallthrough
CT: control target
= control target key end

     0   :  { %vm47_vm0 = vcmask 261120   ;;  %v1255_v3 = vmov 0.0|0.0   ;;  %s1590_s0 = inlined_call_operand.<no memory space> [shape: s32[1], index: 0, kind: input, shape index: {}]   ;;  %s1591_s1 = inlined_call_operand.<no memory space> [shape: f32[1], index: 1, kind: input, shape index: {}]   ;;  %s1592_s2 = inlined_call_operand.vmem [shape: f32[8,32], index: 2, kind: input, shape index: {}]   ;;  %s1593_s3 = inlined_call_operand.vmem [shape: f32[128,32], index: 3, kind: input, shape index: {}]   ;;  %s1594_s4 = inlined_call_operand.vmem [shape: f32[1,128], index: 4, kind: input, shape index: {}]   ;;  %s1595_s5 = inlined_call_operand.hbm [shape: f32[8,128], index: 5, kind: output, shape index: {}]  }
   0x1   :  { %v24_v0 = vld [vmem:[%s1593_s3] sm:$0xff]  ;;  %v25_v1 = vld [vmem:[%s1593_s3 + $0x8] sm:$0xff]  ;;  %v26_v2 = vld [vmem:[%s1593_s3 + $0x10] sm:$0xff]  ;;  %1073 = vmatprep.subr.bf16.mxu1 %v1255_v3  ;;  %1145 = vmatprep.subr.bf16.mxu0 %v1255_v3 }
   0x2   :  { %v52_v4 = vsel %vm47_vm0, %v24_v0, 0  ;;  %v55_v5 = vsel %vm47_vm0, %v25_v1, 0  ;;  %v27_v6 = vld [vmem:[%s1593_s3 + $0x18] sm:$0xff]  ;;  %v58_v9 = vsel %vm47_vm0, %v26_v2, 0 }
   0x3   :  { %v100_v7 = vand.u32 4294901760, %v52_v4  ;;  %v103_v8 = vand.u32 4294901760, %v55_v5  ;;  %v61_v10 = vsel %vm47_vm0, %v27_v6, 0  ;;  %v106_v12 = vand.u32 4294901760, %v58_v9 }
   0x4   :  { %v109_v13 = vand.u32 4294901760, %v61_v10 }
   0x5   :  { %v1307_v11 = vpack.c.bf16 %v103_v8, %v100_v7 }
   0x7   :  { %1075 = vmatpush3.bf16.xpose.msra.mxu1 %v1307_v11  ;;  %1147 = vmatpush3.bf16.xpose.msra.mxu0 %v1307_v11 }
   0x8   :  { %1076 = vmatprep.subr.bf16.mxu1 %v1255_v3  ;;  %1148 = vmatprep.subr.bf16.mxu0 %v1255_v3 }
   0x9   :  { %12 = vsyncpa [#allocation5], 0  ;;  %v28_v14 = vld [vmem:[%s1593_s3 + $0x20] sm:$0xff]  ;;  %v29_v15 = vld [vmem:[%s1593_s3 + $0x28] sm:$0xff]  ;;  %v1319_v16 = vpack.c.bf16 %v109_v13, %v106_v12  ;;  %vm1256_vm1 = vmmov 0   ;;  %v1257_v23 = vmov 0.0   ;;  %v1355_v34 = vsub.f32 %v52_v4, %v100_v7 }
   0xa   :  { %v64_v17 = vsel %vm47_vm0, %v28_v14, 0  ;;  %v67_v18 = vsel %vm47_vm0, %v29_v15, 0  ;;  %v30_v21 = vld [vmem:[%s1593_s3 + $0x30] sm:$0xff]  ;;  %v31_v22 = vld [vmem:[%s1593_s3 + $0x38] sm:$0xff]  ;;  %895 = vmatprep.mubr.msk.f32.mxu1 %vm1256_vm1, %v1257_v23  ;;  %1000 = vmatprep.mubr.msk.f32.mxu0 %vm1256_vm1, %v1257_v23  ;;  %v32_v29 = vld [vmem:[%s1593_s3 + $0x40] sm:$0xff]  ;;  %v1357_v35 = vsub.f32 %v55_v5, %v103_v8  ;;  %v1359_v36 = vsub.f32 %v58_v9, %v106_v12  ;;  %s1258_s27 = smov [#allocation4]  }
   0xb   :  { %v112_v19 = vand.u32 4294901760, %v64_v17  ;;  %v115_v20 = vand.u32 4294901760, %v67_v18  ;;  %v70_v25 = vsel %vm47_vm0, %v30_v21, 0  ;;  %v73_v26 = vsel %vm47_vm0, %v31_v22, 0  ;;  %v33_v30 = vld [vmem:[%s1593_s3 + $0x48] sm:$0xff]  ;;  %v34_v43 = vld [vmem:[%s1593_s3 + $0x50] sm:$0xff] }
   0xc   :  { %v118_v27 = vand.u32 4294901760, %v70_v25  ;;  %v121_v28 = vand.u32 4294901760, %v73_v26  ;;  %v76_v31 = vsel %vm47_vm0, %v32_v29, 0  ;;  %v79_v33 = vsel %vm47_vm0, %v33_v30, 0  ;;  %v35_v44 = vld [vmem:[%s1593_s3 + $0x58] sm:$0xff]  ;;  %v36_v60 = vld [vmem:[%s1593_s3 + $0x60] sm:$0xff] }
   0xd   :  { %v1337_v24 = vpack.c.bf16 %v115_v20, %v112_v19  ;;  %v1361_v37 = vsub.f32 %v61_v10, %v109_v13  ;;  %v124_v38 = vand.u32 4294901760, %v76_v31  ;;  %v1363_v39 = vsub.f32 %v64_v17, %v112_v19  ;;  %v37_v61 = vld [vmem:[%s1593_s3 + $0x68] sm:$0xff]  ;;  %v23_v5 = vld [vmem:[%s1592_s2] sm:$0xff]  ;;  %v38_v8 = vld [vmem:[%s1593_s3 + $0x70] sm:$0xff]  ;;  %s752_s28 = sshll.u32 %s1258_s27, 4  ;;  %s753_s28 = int_to_ptr.vmem [resolvable:$true] %s752_s28 }
   0xe   :  { %v1352_v32 = vpack.c.bf16 %v121_v28, %v118_v27  ;;  %v1365_v40 = vsub.f32 %v67_v18, %v115_v20  ;;  %v1367_v41 = vsub.f32 %v70_v25, %v118_v27  ;;  %v127_v42 = vand.u32 4294901760, %v79_v33  ;;  %v39_v9 = vld [vmem:[%s1593_s3 + $0x78] sm:$0xff]  ;;  %s1231_s29 = scalar_lea.vmem %s753_s28, 128  ;;  %p1236_p1 = scmp.lt.s32.totalorder %s753_s28, %s753_s28 }
   0xf   :  { %1078 = vmatpush3.bf16.xpose.msra.mxu1 %v1319_v16  ;;  %1150 = vmatpush3.bf16.xpose.msra.mxu0 %v1319_v16  ;;  %v1376_v45 = vsub.f32 %v73_v26, %v121_v28  ;;  %v1379_v46 = vsub.f32 %v76_v31, %v124_v38  ;;  %v1122_v47 = vpack.c.bf16 %v1357_v35, %v1355_v34  ;;  %v82_v51 = vsel %vm47_vm0, %v34_v43, 0  ;;  %p1232_p0 = scmp.ne.s32.totalorder %s753_s28, %s1231_s29  ;;  %p1237_p2 = scmp.lt.s32.totalorder %s1231_s29, %s1231_s29 }
  0x10   :  { %1079 = vmatprep.subr.bf16.mxu1 %v1255_v3  ;;  %1151 = vmatprep.subr.bf16.mxu0 %v1255_v3  ;;  %v1385_v48 = vsub.f32 %v79_v33, %v127_v42  ;;  %v1125_v49 = vpack.c.bf16 %v1361_v37, %v1359_v36  ;;  %v1128_v50 = vpack.c.bf16 %v1365_v40, %v1363_v39  ;;  %v85_v52 = vsel %vm47_vm0, %v35_v44, 0 }
  0x11   :  { %v1131_v53 = vpack.c.bf16 %v1376_v45, %v1367_v41  ;;  %v1397_v55 = vpack.c.bf16 %v127_v42, %v124_v38  ;;  %v130_v56 = vand.u32 4294901760, %v82_v51  ;;  %v133_v57 = vand.u32 4294901760, %v85_v52  ;;  %p1238_p3 = por %p1237_p2, %p1236_p1 }
  0x12   :  { %v1134_v54 = vpack.c.bf16 %v1385_v48, %v1379_v46  ;;  %v88_v63 = vsel %vm47_vm0, %v36_v60, 0  ;;  %v91_v0 = vsel %vm47_vm0, %v37_v61, 0  ;;  %v49_v10 = vsel %vm47_vm0, %v23_v5, 0 }
  0x13   :  { %v1399_v58 = vsub.f32 %v82_v51, %v130_v56  ;;  %v1401_v59 = vsub.f32 %v85_v52, %v133_v57  ;;  %v1417_v1 = vpack.c.bf16 %v133_v57, %v130_v56  ;;  %v136_v2 = vand.u32 4294901760, %v88_v63  ;;  %p1239_p4 = pnand %p1238_p3, %p1232_p0 }
  0x14   :  { %v139_v4 = vand.u32 4294901760, %v91_v0  ;;  %v94_v13 = vsel %vm47_vm0, %v38_v8, 0  ;;  %v97_v14 = vsel %vm47_vm0, %v39_v9, 0  ;;  %v1441_v15 = vand.u32 4294901760, %v49_v10 }
  0x15   :  { %v1137_v62 = vpack.c.bf16 %v1401_v59, %v1399_v58  ;;  %v1422_v6 = vsub.f32 %v88_v63, %v136_v2  ;;  %v142_v18 = vand.u32 4294901760, %v94_v13  ;;  %v145_v19 = vand.u32 4294901760, %v97_v14 }
  0x16   :  { %v1424_v7 = vsub.f32 %v91_v0, %v139_v4  ;;  %v1443_v17 = vpack.c.bf16 %v139_v4, %v136_v2  ;;  %v1450_v22 = vsub.f32 %v49_v10, %v1441_v15  ;;  %v193_v25 = vand.u32 4294901760, %v1355_v34 }
  0x17   :  { %1081 = vmatpush3.bf16.xpose.msra.mxu1 %v1337_v24  ;;  %1153 = vmatpush3.bf16.xpose.msra.mxu0 %v1337_v24  ;;  %v1445_v20 = vsub.f32 %v94_v13, %v142_v18  ;;  %v1447_v21 = vsub.f32 %v97_v14, %v145_v19  ;;  %v200_v26 = vand.u32 4294901760, %v1357_v35  ;;  %v1461_v29 = vpack.c.bf16 %v145_v19, %v142_v18 }
  0x18   :  { %1082 = vmatprep.subr.bf16.mxu1 %v1255_v3  ;;  %1154 = vmatprep.subr.bf16.mxu0 %v1255_v3  ;;  %v1140_v12 = vpack.c.bf16 %v1424_v7, %v1422_v6  ;;  %v182_v28 = vand.u32 4294901760, %v1450_v22  ;;  %v194_v30 = vsub.f32 %v1355_v34, %v193_v25  ;;  %v207_v43 = vand.u32 4294901760, %v1359_v36 }
  0x19   :  { %v1143_v27 = vpack.c.bf16 %v1447_v21, %v1445_v20  ;;  %v201_v31 = vsub.f32 %v1357_v35, %v200_v26  ;;  %v214_v44 = vand.u32 4294901760, %v1361_v37  ;;  %v1170_v56 = vpack.c.bf16 %v200_v26, %v193_v25 }
  0x1a   :  { %v183_v33 = vsub.f32 %v1450_v22, %v182_v28  ;;  %v195_v38 = vand.u32 4294901760, %v194_v30  ;;  %v208_v57 = vsub.f32 %v1359_v36, %v207_v43  ;;  %v221_v0 = vand.u32 4294901760, %v1363_v39 }
  0x1b   :  { %v202_v42 = vand.u32 4294901760, %v201_v31  ;;  %v215_v60 = vsub.f32 %v1361_v37, %v214_v44  ;;  %v228_v2 = vand.u32 4294901760, %v1365_v40  ;;  %v1173_v5 = vpack.c.bf16 %v214_v44, %v207_v43 }
  0x1c   :  { %v184_v51 = vand.u32 4294901760, %v183_v33  ;;  %v209_v61 = vand.u32 4294901760, %v208_v57  ;;  %v222_v8 = vsub.f32 %v1363_v39, %v221_v0  ;;  %v235_v14 = vand.u32 4294901760, %v1367_v41 }
  0x1d   :  { %v1098_v52 = vpack.c.bf16 %v202_v42, %v195_v38  ;;  %v216_v63 = vand.u32 4294901760, %v215_v60  ;;  %v229_v9 = vsub.f32 %v1365_v40, %v228_v2  ;;  %v242_v18 = vand.u32 4294901760, %v1376_v45 }
  0x1e   :  { %v223_v10 = vand.u32 4294901760, %v222_v8  ;;  %v1176_v25 = vpack.c.bf16 %v228_v2, %v221_v0  ;;  %v236_v26 = vsub.f32 %v1367_v41, %v235_v14  ;;  %v249_v33 = vand.u32 4294901760, %v1379_v46 }
  0x1f   :  { %1084 = vmatpush3.bf16.xpose.msra.mxu1 %v1352_v32  ;;  %1156 = vmatpush3.bf16.xpose.msra.mxu0 %v1352_v32  ;;  %v1101_v4 = vpack.c.bf16 %v216_v63, %v209_v61  ;;  %v230_v13 = vand.u32 4294901760, %v229_v9  ;;  %v256_v38 = vand.u32 4294901760, %v1385_v48  ;;  %v1179_v43 = vpack.c.bf16 %v242_v18, %v235_v14 }
  0x20   :  { %1085 = vmatprep.subr.bf16.mxu1 %v1255_v3  ;;  %1157 = vmatprep.subr.bf16.mxu0 %v1255_v3  ;;  %v237_v30 = vand.u32 4294901760, %v236_v26  ;;  %v250_v44 = vsub.f32 %v1379_v46, %v249_v33  ;;  %v263_v57 = vand.u32 4294901760, %v1399_v58  ;;  %v270_v60 = vand.u32 4294901760, %v1401_v59 }
  0x21   :  { %v1104_v19 = vpack.c.bf16 %v230_v13, %v223_v10  ;;  %v1182_v63 = vpack.c.bf16 %v256_v38, %v249_v33  ;;  %v277_v8 = vand.u32 4294901760, %v1422_v6  ;;  %v284_v9 = vand.u32 4294901760, %v1424_v7 }
  0x22   :  { %v264_v0 = vsub.f32 %v1399_v58, %v263_v57  ;;  %v271_v2 = vsub.f32 %v1401_v59, %v270_v60  ;;  %v1185_v13 = vpack.c.bf16 %v270_v60, %v263_v57  ;;  %v291_v26 = vand.u32 4294901760, %v1445_v20 }
  0x23   :  { %v278_v14 = vsub.f32 %v1422_v6, %v277_v8 }
  0x24   :  { %v292_v33 = vsub.f32 %v1445_v20, %v291_v26 }
  0x27   :  { %1087 = vmatpush3.bf16.xpose.msra.mxu1 %v1397_v55  ;;  %1159 = vmatpush3.bf16.xpose.msra.mxu0 %v1397_v55 }
  0x28   :  { %1088 = vmatprep.subr.bf16.mxu1 %v1255_v3  ;;  %1160 = vmatprep.subr.bf16.mxu0 %v1255_v3 }
  0x2f   :  { %1090 = vmatpush3.bf16.xpose.msra.mxu1 %v1417_v1  ;;  %1162 = vmatpush3.bf16.xpose.msra.mxu0 %v1417_v1 }
  0x30   :  { %1091 = vmatprep.subr.bf16.mxu1 %v1255_v3  ;;  %1163 = vmatprep.subr.bf16.mxu0 %v1255_v3 }
  0x37   :  { %1093 = vmatpush3.bf16.xpose.msra.mxu1 %v1443_v17  ;;  %1165 = vmatpush3.bf16.xpose.msra.mxu0 %v1443_v17 }
  0x38   :  { %1094 = vmatprep.subr.bf16.mxu1 %v1255_v3  ;;  %1166 = vmatprep.subr.bf16.mxu0 %v1255_v3 }
  0x3f   :  { %1096 = vmatpush3.bf16.xpose.msra.mxu1 %v1461_v29  ;;  %1168 = vmatpush3.bf16.xpose.msra.mxu0 %v1461_v29 }
  0x40   :  { %1097 = vmatprep.subr.bf16.mxu1 %v1255_v3  ;;  %1169 = vmatprep.subr.bf16.mxu0 %v1255_v3 }
  0x46   :  { %896 = vmatmul.mubr.f32.vlgmr.msra.gmra.mrb[0].mxu1 %v184_v51  ;;  %1001 = vmatmul.mubr.f32.vlgmr.msra.gmra.mrb[0].mxu0 %v182_v28  ;;  %v243_v28 = vsub.f32 %v1376_v45, %v242_v18  ;;  %v257_v51 = vsub.f32 %v1385_v48, %v256_v38  ;;  %v285_v18 = vsub.f32 %v1424_v7, %v284_v9 }
  0x47   :  { %1099 = vmatpush3.bf16.xpose.msra.mxu1 %v1098_v52  ;;  %1171 = vmatpush3.bf16.xpose.msra.mxu0 %v1170_v56  ;;  %v251_v52 = vand.u32 4294901760, %v250_v44 }
  0x48   :  { %1100 = vmatprep.subr.bf16.mxu1 %v1255_v3  ;;  %1172 = vmatprep.subr.bf16.mxu0 %v1255_v3  ;;  %v244_v31 = vand.u32 4294901760, %v243_v28  ;;  %v258_v56 = vand.u32 4294901760, %v257_v51  ;;  %v298_v28 = vand.u32 4294901760, %v1447_v21 }
  0x49   :  { %930 = vmatprep.mubr.msk.f32.mxu1 %vm1256_vm1, %v1257_v23  ;;  %1035 = vmatprep.mubr.msk.f32.mxu0 %vm1256_vm1, %v1257_v23 }
  0x4a   :  { %v1107_v42 = vpack.c.bf16 %v244_v31, %v237_v30  ;;  %v1110_v61 = vpack.c.bf16 %v258_v56, %v251_v52  ;;  %v1188_v31 = vpack.c.bf16 %v284_v9, %v277_v8  ;;  %v299_v38 = vsub.f32 %v1447_v21, %v298_v28 }
  0x4b   :  { %v1191_v51 = vpack.c.bf16 %v298_v28, %v291_v26 }
  0x4f   :  { %1102 = vmatpush3.bf16.xpose.msra.mxu1 %v1101_v4  ;;  %1174 = vmatpush3.bf16.xpose.msra.mxu0 %v1173_v5  ;;  %v265_v4 = vand.u32 4294901760, %v264_v0  ;;  %v272_v5 = vand.u32 4294901760, %v271_v2 }
  0x50   :  { %1103 = vmatprep.subr.bf16.mxu1 %v1255_v3  ;;  %1175 = vmatprep.subr.bf16.mxu0 %v1255_v3 }
  0x51   :  { %v1113_v10 = vpack.c.bf16 %v272_v5, %v265_v4 }
  0x57   :  { %1105 = vmatpush3.bf16.xpose.msra.mxu1 %v1104_v19  ;;  %1177 = vmatpush3.bf16.xpose.msra.mxu0 %v1176_v25  ;;  %v279_v19 = vand.u32 4294901760, %v278_v14  ;;  %v286_v25 = vand.u32 4294901760, %v285_v18 }
  0x58   :  { %1106 = vmatprep.subr.bf16.mxu1 %v1255_v3  ;;  %1178 = vmatprep.subr.bf16.mxu0 %v1255_v3 }
  0x59   :  { %v1116_v30 = vpack.c.bf16 %v286_v25, %v279_v19 }
  0x5f   :  { %1108 = vmatpush3.bf16.xpose.msra.mxu1 %v1107_v42  ;;  %1180 = vmatpush3.bf16.xpose.msra.mxu0 %v1179_v43  ;;  %v293_v42 = vand.u32 4294901760, %v292_v33  ;;  %v300_v43 = vand.u32 4294901760, %v299_v38 }
  0x60   :  { %1109 = vmatprep.subr.bf16.mxu1 %v1255_v3  ;;  %1181 = vmatprep.subr.bf16.mxu0 %v1255_v3 }
  0x61   :  { %v1119_v44 = vpack.c.bf16 %v300_v43, %v293_v42 }
  0x67   :  { %1111 = vmatpush3.bf16.xpose.msra.mxu1 %v1110_v61  ;;  %1183 = vmatpush3.bf16.xpose.msra.mxu0 %v1182_v63 }
  0x68   :  { %1112 = vmatprep.subr.bf16.mxu1 %v1255_v3  ;;  %1184 = vmatprep.subr.bf16.mxu0 %v1255_v3 }
  0x6f   :  { %1114 = vmatpush3.bf16.xpose.msra.mxu1 %v1113_v10  ;;  %1186 = vmatpush3.bf16.xpose.msra.mxu0 %v1185_v13 }
  0x70   :  { %1115 = vmatprep.subr.bf16.mxu1 %v1255_v3  ;;  %1187 = vmatprep.subr.bf16.mxu0 %v1255_v3 }
  0x77   :  { %1117 = vmatpush3.bf16.xpose.msra.mxu1 %v1116_v30  ;;  %1189 = vmatpush3.bf16.xpose.msra.mxu0 %v1188_v31 }
  0x78   :  { %1118 = vmatprep.subr.bf16.mxu1 %v1255_v3  ;;  %1190 = vmatprep.subr.bf16.mxu0 %v1255_v3 }
  0x7f   :  { %1120 = vmatpush3.bf16.xpose.msra.mxu1 %v1119_v44  ;;  %1192 = vmatpush3.bf16.xpose.msra.mxu0 %v1191_v51 }
  0x80   :  { %1121 = vmatprep.subr.bf16.mxu1 %v1255_v3  ;;  %1193 = vmatprep.subr.bf16.mxu0 %v1255_v3 }
  0x86   :  { %931 = vmatmul.mubr.f32.vlgmr.msra.gmra.mrb[0].mxu1 %v1441_v15  ;;  %1036 = vmatmul.mubr.f32.vlgmr.msra.gmra.mrb[0].mxu0 %v1441_v15 }
  0x87   :  { %1123 = vmatpush3.bf16.xpose.msra.mxu1 %v1122_v47  ;;  %1195 = vmatpush3.bf16.xpose.msra.mxu0 %v1307_v11  ;;  %v760_v11 = vld [vmem:[%s1594_s4] ss:$0 sm:$0xff] }
  0x88   :  { %1124 = vmatprep.subr.bf16.mxu1 %v1255_v3  ;;  %1196 = vmatprep.subr.bf16.mxu0 %v1255_v3 }
  0x89   :  { %965 = vmatprep.mubr.msk.f32.mxu1 %vm1256_vm1, %v1257_v23  ;;  %1070 = vmatprep.mubr.msk.f32.mxu0 %vm1256_vm1, %v1257_v23 }
  0x8f   :  { %1126 = vmatpush3.bf16.xpose.msra.mxu1 %v1125_v49  ;;  %1198 = vmatpush3.bf16.xpose.msra.mxu0 %v1319_v16 }
  0x90   :  { %1127 = vmatprep.subr.bf16.mxu1 %v1255_v3  ;;  %1199 = vmatprep.subr.bf16.mxu0 %v1255_v3 }
  0x97   :  { %1129 = vmatpush3.bf16.xpose.msra.mxu1 %v1128_v50  ;;  %1201 = vmatpush3.bf16.xpose.msra.mxu0 %v1337_v24 }
  0x98   :  { %1130 = vmatprep.subr.bf16.mxu1 %v1255_v3  ;;  %1202 = vmatprep.subr.bf16.mxu0 %v1255_v3 }
  0x9f   :  { %1132 = vmatpush3.bf16.xpose.msra.mxu1 %v1131_v53  ;;  %1204 = vmatpush3.bf16.xpose.msra.mxu0 %v1352_v32 }
  0xa0   :  { %1133 = vmatprep.subr.bf16.mxu1 %v1255_v3  ;;  %1205 = vmatprep.subr.bf16.mxu0 %v1255_v3 }
  0xa7   :  { %1135 = vmatpush3.bf16.xpose.msra.mxu1 %v1134_v54  ;;  %1207 = vmatpush3.bf16.xpose.msra.mxu0 %v1397_v55 }
  0xa8   :  { %1136 = vmatprep.subr.bf16.mxu1 %v1255_v3  ;;  %1208 = vmatprep.subr.bf16.mxu0 %v1255_v3 }
  0xaf   :  { %1138 = vmatpush3.bf16.xpose.msra.mxu1 %v1137_v62  ;;  %1210 = vmatpush3.bf16.xpose.msra.mxu0 %v1417_v1 }
  0xb0   :  { %1139 = vmatprep.subr.bf16.mxu1 %v1255_v3  ;;  %1211 = vmatprep.subr.bf16.mxu0 %v1255_v3 }
  0xb7   :  { %1141 = vmatpush3.bf16.xpose.msra.mxu1 %v1140_v12  ;;  %1213 = vmatpush3.bf16.xpose.msra.mxu0 %v1443_v17 }
  0xb8   :  { %1142 = vmatprep.subr.bf16.mxu1 %v1255_v3  ;;  %1214 = vmatprep.subr.bf16.mxu0 %v1255_v3  ;;  %v742_v3 = vstv %s1591_s1 }
  0xbf   :  { %1144 = vmatpush3.bf16.xpose.msra.mxu1 %v1143_v27  ;;  %1216 = vmatpush3.bf16.xpose.msra.mxu0 %v1461_v29 }
  0xc6   :  { %966 = vmatmul.mubr.f32.vlgmr.msra.gmra.mrb[0].mxu1 %v1450_v22  ;;  %1071 = vmatmul.mubr.f32.vlgmr.msra.gmra.mrb[0].mxu0 %v1441_v15 }
 0x199   :  { %v441_v16 = vpop.f32.mrb[0].mxu1  ;;  %v736_v23 = vpop.f32.mrb[0].mxu0 }
 0x19a   :  { %v1217_v24 = vadd.f32 %v760_v11, %v441_v16  ;;  %v967_v32 = vpop.f32.mrb[1].mxu1  ;;  %v1072_v34 = vpop.f32.mrb[1].mxu0 }
 0x19c   :  { %v1218_v35 = vadd.f32 %v1217_v24, %v736_v23 }
 0x19e   :  { %v743_v36 = vmul.f32 %v1218_v35, %v742_v3  ;;  %vm741_vm2 = vcmp.gt.f32.partialorder %v1218_v35, 0.0 }
 0x1a0   :  { %v744_v37 = vsel %vm741_vm2, %v1218_v35, %v743_v36 }
 0x1a1   :  { %745 = vst [vmem:[#allocation4] sm:$0xff] %v744_v37 }
 0x1a2   :  { %1242 = shalt.err (!%p1239_p4)
}
 0x1a3   :  { %s1243_s6 = scalar_lea.hbm %s1595_s5, 128 }
 0x1a4   :  { %p1244_p5 = scmp.ne.s32.totalorder %s1595_s5, %s1243_s6  ;;  %p1247_p6 = scmp.lt.u32.totalorder %s1243_s6, %s1595_s5 }
 0x1a6   :  { %p1249_p7 = pnand %p1247_p6, %p1244_p5 }
 0x1a8   :  { %1252 = shalt.err (!%p1249_p7)
}
 0x1a9   :  { %755 = dma.vmem_to_hbm [thread:$0]  %s753_s28, 128, %s1595_s5, [#allocation5]  }
 0x1aa   :  { %1253 = dma.done.wait [#allocation5], 128  }
 0x1ab   :  { %1254 = vsyncadd [#allocation5], 4294967168 }
 0x1ac   :  { %759 = vsyncpa [#allocation5], 1 }

</bundles_post_ra>
